<compile_context>
chip_gen: v5e
topology: v5e:2x2
jax: 0.10.0
libtpu: 0.0.40
codegen_flags: <defaults>
</compile_context>

<pallas_src>
import math
import functools

import jax
import jax.numpy as jnp
from jax.experimental import pallas as pl
from jax.experimental.pallas import tpu as pltpu

_HALF_LOG_2PI = 0.5 * math.log(2.0 * math.pi)
_LANES = 128
_TARGET_TILE_BYTES = 8 << 20     # ~8 MiB of z per tile buffer (VMEM footprint)
_MAX_VMEM_LIMIT = 48 << 20


def _round_up(x, m):
    return ((x + m - 1) // m) * m


# ---------------------------------------------------------------------------
# Kernels — lane-folded path (128 % M == 0): z viewed as (B*M/128, 128)
# ---------------------------------------------------------------------------
def _std_logprob_folded_kernel(zf_ref, grp_ref, out_ref, *, norm_const):
    # zf_ref: (TBf, 128) folded tile; grp_ref: (128, G) 0/1 group selector;
    # out_ref: (TBf, G).  out[r, j] = -0.5 * sum_{lanes of group j} z^2 - const.
    z = zf_ref[...].astype(jnp.float32)
    ssum = jnp.dot(z * z, grp_ref[...],
                   preferred_element_type=jnp.float32,
                   precision=jax.lax.Precision.HIGHEST)
    out_ref[...] = -0.5 * ssum - norm_const


def _gauss_logprob_folded_kernel(zf_ref, mean_ref, inv_std_ref, grp_ref,
                                 const_ref, out_ref):
    # General diagonal Gaussian, constants hoisted:  diff = (z - mean)*inv_std,
    # log p = -0.5*sum(diff^2) - (sum(log std) + M/2*log(2*pi)).
    z = zf_ref[...].astype(jnp.float32)
    diff = (z - mean_ref[...]) * inv_std_ref[...]
    ssum = jnp.dot(diff * diff, grp_ref[...],
                   preferred_element_type=jnp.float32,
                   precision=jax.lax.Precision.HIGHEST)
    out_ref[...] = -0.5 * ssum - const_ref[...]


# ---------------------------------------------------------------------------
# Kernels — row-per-sublane fallback (arbitrary M, or B not a group multiple)
# ---------------------------------------------------------------------------
def _std_logprob_rows_kernel(z_ref, out_ref, *, norm_const):
    z = z_ref[...].astype(jnp.float32)
    out_ref[...] = -0.5 * jnp.sum(z * z, axis=-1, keepdims=True) - norm_const


def _gauss_logprob_rows_kernel(z_ref, mean_ref, inv_std_ref, const_ref, out_ref):
    z = z_ref[...].astype(jnp.float32)
    diff = (z - mean_ref[...]) * inv_std_ref[...]
    out_ref[...] = (-0.5 * jnp.sum(diff * diff, axis=-1, keepdims=True)
                    - const_ref[...])


# ---------------------------------------------------------------------------
# Tiling helpers
# ---------------------------------------------------------------------------
def _pick_tile_rows(total_rows, row_bytes_vmem, itemsize, tile_rows=None):
    """Rows per tile: ~_TARGET_TILE_BYTES of VMEM-resident bytes per buffer,
    sublane aligned, capped so the 1-D 'parallel' grid keeps >= 2 blocks
    (so v7x's two TensorCores both get work)."""
    row_align = 8 * max(4 // max(itemsize, 1), 1)       # 8 (f32), 16 (bf16)
    if tile_rows is not None:
        return max(row_align, _round_up(int(tile_rows), row_align))
    rows = (_TARGET_TILE_BYTES // max(row_bytes_vmem, 1)) // row_align * row_align
    rows = max(rows, row_align)
    half = _round_up(pl.cdiv(total_rows, 2), row_align)  # keep >= 2 grid steps
    return min(rows, max(half, row_align))


def _vmem_limit(tile_in_bytes, tile_out_bytes, pinned_bytes):
    # Double-buffered input + output tiles + pinned rows + generous headroom.
    needed = 2 * tile_in_bytes + 2 * tile_out_bytes + pinned_bytes + (4 << 20)
    return int(min(max(needed, 16 << 20), _MAX_VMEM_LIMIT))


# ---------------------------------------------------------------------------
# log_prob wrapper
# ---------------------------------------------------------------------------
def _log_prob_pallas(z, mean, std, is_standard, tile_rows=None):
    """z: (B, M) -> (B,) log-prob under Independent(Normal(mean, std), 1)."""
    B, M = z.shape
    itemsize = z.dtype.itemsize
    norm_const = float(M) * _HALF_LOG_2PI
    sem = pltpu.CompilerParams  # alias for brevity below

    can_fold = (_LANES % M == 0) and ((B * M) % _LANES == 0)

    if can_fold:
        # --- lane-folded path: every vreg lane carries payload ---------------
        G = _LANES // M                       # original rows per folded row
        Bf = B // G
        zf = z.reshape(Bf, _LANES)            # contiguous row-major: free bitcast
        TBf = _pick_tile_rows(Bf, _LANES * itemsize, itemsize, tile_rows)
        n_blocks = pl.cdiv(Bf, TBf)

        lane = jnp.arange(_LANES, dtype=jnp.int32)
        grp = (lane[:, None] // M ==
               jnp.arange(G, dtype=jnp.int32)[None, :]).astype(jnp.float32)

        cost = pl.CostEstimate(
            flops=int((2 + 2 * G) * Bf * _LANES),
            transcendentals=0,
            bytes_accessed=int(itemsize * Bf * _LANES + 4 * Bf * G
                               + 4 * _LANES * (G + 2) + 4),
        )
        params = sem(
            dimension_semantics=("parallel",),
            vmem_limit_bytes=_vmem_limit(TBf * _LANES * itemsize,
                                         TBf * G * 4,
                                         _LANES * (G + 2) * 4),
        )

        if is_standard:
            out = pl.pallas_call(
                functools.partial(_std_logprob_folded_kernel,
                                  norm_const=norm_const),
                out_shape=jax.ShapeDtypeStruct((Bf, G), jnp.float32),
                grid=(n_blocks,),
                in_specs=[pl.BlockSpec((TBf, _LANES), lambda i: (i, 0)),
                          pl.BlockSpec((_LANES, G), lambda i: (0, 0))],
                out_specs=pl.BlockSpec((TBf, G), lambda i: (i, 0)),
                compiler_params=params,
                cost_estimate=cost,
            )(zf, grp)
        else:
            std_f32 = std.astype(jnp.float32)
            mean_t = jnp.tile(mean.astype(jnp.float32), G).reshape(1, _LANES)
            inv_std_t = jnp.tile(1.0 / std_f32, G).reshape(1, _LANES)
            const = (jnp.sum(jnp.log(std_f32)) + norm_const).reshape(1, 1)
            out = pl.pallas_call(
                _gauss_logprob_folded_kernel,
                out_shape=jax.ShapeDtypeStruct((Bf, G), jnp.float32),
                grid=(n_blocks,),
                in_specs=[pl.BlockSpec((TBf, _LANES), lambda i: (i, 0)),
                          pl.BlockSpec((1, _LANES), lambda i: (0, 0)),
                          pl.BlockSpec((1, _LANES), lambda i: (0, 0)),
                          pl.BlockSpec((_LANES, G), lambda i: (0, 0)),
                          pl.BlockSpec((1, 1), lambda i: (0, 0))],
                out_specs=pl.BlockSpec((TBf, G), lambda i: (i, 0)),
                compiler_params=params,
                cost_estimate=cost,
            )(zf, mean_t, inv_std_t, grp, const)
        return out.reshape(B)

    # --- fallback path: one latent vector per sublane row --------------------
    lane_pad = _round_up(M, _LANES)           # VMEM lane padding of the tile
    TB = _pick_tile_rows(B, lane_pad * itemsize, itemsize, tile_rows)
    n_blocks = pl.cdiv(B, TB)

    cost = pl.CostEstimate(
        flops=int((3 if is_standard else 5) * B * M),
        transcendentals=0,
        bytes_accessed=int(itemsize * B * M + 4 * B
                           + (0 if is_standard else 8 * M + 4)),
    )
    params = sem(
        dimension_semantics=("parallel",),
        vmem_limit_bytes=_vmem_limit(TB * lane_pad * itemsize, TB * 4,
                                     3 * lane_pad * 4),
    )

    if is_standard:
        out = pl.pallas_call(
            functools.partial(_std_logprob_rows_kernel, norm_const=norm_const),
            out_shape=jax.ShapeDtypeStruct((B, 1), jnp.float32),
            grid=(n_blocks,),
            in_specs=[pl.BlockSpec((TB, M), lambda i: (i, 0))],
            out_specs=pl.BlockSpec((TB, 1), lambda i: (i, 0)),
            compiler_params=params,
            cost_estimate=cost,
        )(z)
    else:
        std_f32 = std.astype(jnp.float32)
        mean2d = mean.astype(jnp.float32).reshape(1, M)
        inv_std2d = (1.0 / std_f32).reshape(1, M)                 # O(M) hoist
        const = (jnp.sum(jnp.log(std_f32)) + norm_const).reshape(1, 1)
        out = pl.pallas_call(
            _gauss_logprob_rows_kernel,
            out_shape=jax.ShapeDtypeStruct((B, 1), jnp.float32),
            grid=(n_blocks,),
            in_specs=[pl.BlockSpec((TB, M), lambda i: (i, 0)),
                      pl.BlockSpec((1, M), lambda i: (0, 0)),
                      pl.BlockSpec((1, M), lambda i: (0, 0)),
                      pl.BlockSpec((1, 1), lambda i: (0, 0))],
            out_specs=pl.BlockSpec((TB, 1), lambda i: (i, 0)),
            compiler_params=params,
            cost_estimate=cost,
        )(z, mean2d, inv_std2d, const)
    return out[:, 0]


# ---------------------------------------------------------------------------
# Distribution-like wrapper + module port
# ---------------------------------------------------------------------------
class _IndependentNormalPallas:
    """Lightweight stand-in for td.Independent(td.Normal(mean, std), 1)."""
    # TODO(synk): other td.Distribution methods (entropy, cdf, kl) not ported.

    def __init__(self, mean, std, is_standard):
        self.mean = mean
        self.std = std
        self._is_standard = is_standard

    def log_prob(self, z):
        z = jnp.asarray(z)
        batch_shape = z.shape[:-1]
        z2 = z.reshape(-1, z.shape[-1])
        lp = _log_prob_pallas(z2, self.mean, self.std, self._is_standard)
        return lp.reshape(batch_shape)

    def rsample(self, key, sample_shape=()):
        # Reparameterized sample: mean + std * eps (pure elementwise glue).
        eps = jax.random.normal(key, tuple(sample_shape) + self.mean.shape,
                                dtype=jnp.float32)
        return self.mean + self.std * eps

    sample = rsample


class GaussianPriorPallas:
    """JAX/Pallas port of GaussianPrior(M): frozen N(0, I) prior on an M-dim latent."""

    def __init__(self, M: int):
        self.M = M
        # Deterministic parameter init, exactly as the PyTorch module
        # (nn.Parameter with requires_grad=False, never updated).
        self.mean = jnp.zeros((M,), dtype=jnp.float32)
        self.std = jnp.ones((M,), dtype=jnp.float32)
        self._is_standard = True   # module fixes mean=0, std=1

    def forward(self):
        """Mirror of the PyTorch forward(): return the prior distribution."""
        return _IndependentNormalPallas(self.mean, self.std, self._is_standard)

    __call__ = forward


# ---------------------------------------------------------------------------
# Pure-JAX reference for verification
# ---------------------------------------------------------------------------
def _reference_log_prob(z, mean, std):
    z = z.astype(jnp.float32)
    diff = (z - mean[None, :]) / std[None, :]
    ld = -0.5 * diff * diff - jnp.log(std)[None, :] - _HALF_LOG_2PI
    return jnp.sum(ld, axis=-1)


if __name__ == "__main__":
    key = jax.random.PRNGKey(0)
    k_z, k_s, k_m, k_sd, k_z2 = jax.random.split(key, 5)

    M = 32     # latent dimension (folds 4 latent rows per 128-lane vreg row)
    B = 200    # batch of latent samples
    prior = GaussianPriorPallas(M)
    dist = prior()    # forward(): distribution-like object

    z = jax.random.normal(k_z, (B, M), dtype=jnp.float32)
    ref = _reference_log_prob(z, prior.mean, prior.std)

    # (a) standard-normal fast path, lane-folded, default tile sizing.
    logp = jax.block_until_ready(dist.log_prob(z))
    assert logp.shape == (B,)
    assert jnp.allclose(logp, ref, atol=1e-3, rtol=1e-5)

    # (b) forced small tile -> multi-block grid with a ragged (OOB) last block.
    logp_t = jax.block_until_ready(
        _log_prob_pallas(z, prior.mean, prior.std, True, tile_rows=16))
    assert jnp.allclose(logp_t, ref, atol=1e-3, rtol=1e-5)

    # (c) general diagonal-Gaussian parameters on the folded path.
    mean_g = jax.random.normal(k_m, (M,), dtype=jnp.float32)
    std_g = jax.nn.softplus(jax.random.normal(k_sd, (M,), dtype=jnp.float32)) + 0.1
    logp_g = jax.block_until_ready(
        _log_prob_pallas(z, mean_g, std_g, False, tile_rows=16))
    assert jnp.allclose(logp_g, _reference_log_prob(z, mean_g, std_g),
                        atol=1e-3, rtol=1e-5)

    # (d) fallback row-per-sublane path (M does not divide 128), ragged batch.
    M2, B2 = 48, 100
    z2 = jax.random.normal(k_z2, (B2, M2), dtype=jnp.float32)
    mean0 = jnp.zeros((M2,), jnp.float32)
    std0 = jnp.ones((M2,), jnp.float32)
    logp2 = jax.block_until_ready(_log_prob_pallas(z2, mean0, std0, True))
    assert jnp.allclose(logp2, _reference_log_prob(z2, mean0, std0),
                        atol=1e-3, rtol=1e-5)
    mean2 = jax.random.normal(k_m, (M2,), dtype=jnp.float32)
    std2 = jax.nn.softplus(jax.random.normal(k_sd, (M2,), dtype=jnp.float32)) + 0.1
    logp2g = jax.block_until_ready(_log_prob_pallas(z2, mean2, std2, False))
    assert jnp.allclose(logp2g, _reference_log_prob(z2, mean2, std2),
                        atol=1e-3, rtol=1e-5)

    # rsample glue path.
    s = jax.block_until_ready(dist.rsample(k_s, (4,)))
    assert s.shape == (4, M)

    print("KERNEL_OK")
</pallas_src>

<mosaic_0001>
module attributes {stable_mosaic.version = 11 : i64} {
  func.func @_std_logprob_folded_kernel(%arg0: i32, %arg1: memref<32x128xf32, #tpu.memory_space<vmem>>, %arg2: memref<128x4xf32, #tpu.memory_space<vmem>>, %arg3: memref<32x4xf32, #tpu.memory_space<vmem>>) attributes {dimension_semantics = [#tpu.dimension_semantics<parallel>], iteration_bounds = array<i64: 2>, scalar_prefetch = 0 : i64, scratch_operands = 0 : i64, tpu.core_type = #tpu.core_type<tc>, window_params = [{transform_indices = @transform_0, window_bounds = array<i64: 32, 128>}, {pipeline_mode = #tpu.pipeline_mode<synchronous>, transform_indices = @transform_1, window_bounds = array<i64: 128, 4>}, {transform_indices = @transform_2, window_bounds = array<i64: 32, 4>}]} {
    %c0 = arith.constant 0 : index
    %c0_0 = arith.constant 0 : index
    %0 = vector.load %arg1[%c0, %c0_0] : memref<32x128xf32, #tpu.memory_space<vmem>>, vector<32x128xf32>
    %1 = arith.mulf %0, %0 : vector<32x128xf32>
    %c0_1 = arith.constant 0 : index
    %c0_2 = arith.constant 0 : index
    %2 = vector.load %arg2[%c0_1, %c0_2] : memref<128x4xf32, #tpu.memory_space<vmem>>, vector<128x4xf32>
    %cst = arith.constant dense<0.000000e+00> : vector<32x4xf32>
    %3 = tpu.matmul %1, %2, %cst {dimension_numbers = #tpu.dot_dimension_numbers<[1], [0], [0], [1], [0, 0, 1, 1], [], []>, precision = #tpu.contract_precision<fp32>} : vector<32x128xf32>, vector<128x4xf32>, vector<32x4xf32> -> vector<32x4xf32>
    %cst_3 = arith.constant -5.000000e-01 : f32
    %4 = vector.broadcast %cst_3 : f32 to vector<32x4xf32>
    %5 = arith.mulf %4, %3 : vector<32x4xf32>
    %cst_4 = arith.constant 29.4060326 : f32
    %6 = vector.broadcast %cst_4 : f32 to vector<32x4xf32>
    %7 = arith.subf %5, %6 : vector<32x4xf32>
    %c0_5 = arith.constant 0 : index
    %c0_6 = arith.constant 0 : index
    %8 = vector.load %arg3[%c0_5, %c0_6] : memref<32x4xf32, #tpu.memory_space<vmem>>, vector<32x4xf32>
    tpu.vector_store %arg3[%c0_5, %c0_6], %7 {strides = array<i32>} : memref<32x4xf32, #tpu.memory_space<vmem>>, vector<32x4xf32>,
    return
  }
  func.func @transform_0(%arg0: i32) -> (i32, i32) {
    %c0_i32 = arith.constant 0 : i32
    %c0_i32_0 = arith.constant 0 : i32
    return %arg0, %c0_i32 : i32, i32
  }
  func.func @transform_1(%arg0: i32) -> (i32, i32) {
    %c0_i32 = arith.constant 0 : i32
    %c0_i32_0 = arith.constant 0 : i32
    %c0_i32_1 = arith.constant 0 : i32
    return %c0_i32, %c0_i32_0 : i32, i32
  }
  func.func @transform_2(%arg0: i32) -> (i32, i32) {
    %c0_i32 = arith.constant 0 : i32
    %c0_i32_0 = arith.constant 0 : i32
    return %arg0, %c0_i32 : i32, i32
  }
}

</mosaic_0001>

<bundles_post_ra>
// kernel: tpu_custom_call.1
= control target key start
LH: loop header
LB: loop body
LE: loop exit
PB: predicated region body
PF: predicated region fallthrough
CT: control target
= control target key end

     0   :  { %s1118_s9 = smov 0   ;;  %s1120_s10 = smov 0   ;;  %s1525_s0 = inlined_call_operand.vmem [shape: f32[50,128], index: 0, kind: input, shape index: {}]   ;;  %s1526_s1 = inlined_call_operand.vmem [shape: f32[128,4], index: 1, kind: input, shape index: {}]   ;;  %s1527_s2 = inlined_call_operand.vmem [shape: f32[50,4], index: 2, kind: output, shape index: {}]  }
   0x1   :  { %s1122_s11 = smov 0  }
   0x2 LB: > { %s1131_s12 = sadd.s32 4294967295, %s1069_s11   ;;  %s1133_s13 = sadd.s32 1, %s1069_s11   ;;  %s1069_s11 = sphi %s1122_s11, %s1534_s11   ;;  %s1065_s10 = sphi %s1120_s10, %s1533_s10   ;;  %s1061_s9 = sphi %s1118_s9, %s1532_s9  }
   0x3   : > { %s63_s14 = ssub.s32 %s1069_s11, %s1133_s13  ;;  %s66_s15 = sadd.s32 1, %s1065_s10 }
   0x4   : > { %p64_p0 = scmp.eq.s32.totalorder %s63_s14, 0  ;;  %p76_p1 = scmp.ne.s32.totalorder %s1065_s10, %s1061_s9 }
   0x5   : > { %p77_p2 = scmp.eq.s32.totalorder %s1131_s12, 1  ;;  %p867_p3 = scmp.ge.s32.totalorder %s1069_s11, 1 }
   0x6   : > { %s1141_s16 = scalar_select %p64_p0, %s1065_s10, %s66_s15  }
   0x7   : > { %p1143_p4 = por %p77_p2, %p76_p1  ;;  %p121_p5 = scmp.lt.s32.totalorder %s1069_s11, 3 }
   0x9   : > { %p122_p6 = pnand %p867_p3, %p121_p5 }
   0xa   : > { %s1157_s24 = sshll.u32 (!%p122_p6), %s1131_s12, 2  ;;  %s143_s7 = sand.u32 (!%p122_p6), 1, %s1061_s9  }
   0xb   : > { %125 = sbr.rel (%p122_p6) target bundleno = 280 (0x118), region = 28  ;;  %p151_p7 = scmp.lt.s32.totalorder (!%p122_p6), %s1157_s24, 6 }
   0xc   : > { %s868_s8 = sshll.u32 (!%p122_p6), %s143_s7, 5 }
   0xd   : > { %s1459_s9 = scalar_lea.vmem (!%p122_p6), [#allocation2], %s868_s8  }
  0x10   : > { %v188_v0 = vld [vmem:[%s1526_s1 + $0x78] sm:$0xff]  ;;  %v187_v1 = vld [vmem:[%s1526_s1 + $0x70] sm:$0xff]  ;;  %v186_v2 = vld [vmem:[%s1526_s1 + $0x68] sm:$0xff]  ;;  %s1213_s15 = scalar_select %p151_p7, %s1157_s24, 6  ;;  %vm631_vm0 = vcmask 31744  }
  0x11   : > { %v1159_v3 = vand.u32 4294901760, %v188_v0  ;;  %v1161_v4 = vand.u32 4294901760, %v187_v1  ;;  %v1163_v5 = vand.u32 4294901760, %v186_v2  ;;  %v185_v6 = vld [vmem:[%s1526_s1 + $0x60] sm:$0xff]  ;;  %v184_v7 = vld [vmem:[%s1526_s1 + $0x58] sm:$0xff]  ;;  %v183_v8 = vld [vmem:[%s1526_s1 + $0x50] sm:$0xff] }
  0x12   : > { %v1174_v9 = vand.u32 4294901760, %v185_v6  ;;  %v1176_v10 = vand.u32 4294901760, %v184_v7  ;;  %v1178_v11 = vand.u32 4294901760, %v183_v8  ;;  %v182_v12 = vld [vmem:[%s1526_s1 + $0x48] sm:$0xff]  ;;  %v181_v13 = vld [vmem:[%s1526_s1 + $0x40] sm:$0xff]  ;;  %v180_v18 = vld [vmem:[%s1526_s1 + $0x38] sm:$0xff] }
  0x13   : > { %190 = vmatpush.msra.mxu0 %v1159_v3  ;;  %v255_v14 = vsub.f32 %v188_v0, %v1159_v3  ;;  %v261_v15 = vsub.f32 %v187_v1, %v1161_v4  ;;  %437 = vmatpush.msra.mxu3 %v1159_v3  ;;  %v267_v16 = vsub.f32 %v186_v2, %v1163_v5  ;;  %v1191_v17 = vand.u32 4294901760, %v182_v12  ;;  %v179_v26 = vld [vmem:[%s1526_s1 + $0x30] sm:$0xff]  ;;  %v178_v36 = vld [vmem:[%s1526_s1 + $0x28] sm:$0xff]  ;;  %s870_s20 = sshll.u32 %s1213_s15, 3  ;;  %v177_v43 = vld [vmem:[%s1526_s1 + $0x20] sm:$0xff]  ;;  %s644_s11 = ssub.s32 (%p1143_p4), 7, %s1157_s24 }
  0x14   : > { %v273_v19 = vsub.f32 %v185_v6, %v1174_v9  ;;  %v279_v20 = vsub.f32 %v184_v7, %v1176_v10  ;;  %v1199_v21 = vand.u32 4294901760, %v181_v13  ;;  %v285_v25 = vsub.f32 %v183_v8, %v1178_v11  ;;  %s1260_s26 = scalar_lea.vmem %s1525_s0, %s870_s20  ;;  %v176_v49 = vld [vmem:[%s1526_s1 + $0x18] sm:$0xff]  ;;  %v175_v55 = vld [vmem:[%s1526_s1 + $0x10] sm:$0xff]  ;;  %v174_v62 = vld [vmem:[%s1526_s1 + $0x8] sm:$0xff]  ;;  %s892_s14 = sshll.u32 (%p1143_p4), %s1131_s12, 5 }
  0x15   : > { %192 = vmatpush.msra.mxu0 %v1161_v4  ;;  %369 = vmatpush.msra.mxu2 %v255_v14  ;;  %v1202_v22 = vand.u32 4294901760, %v255_v14  ;;  %v1204_v23 = vand.u32 4294901760, %v261_v15  ;;  %v1206_v24 = vand.u32 4294901760, %v267_v16  ;;  %v1219_v28 = vsub.f32 %v182_v12, %v1191_v17  ;;  %v165_v56 = vld [vmem:[%s1260_s26] sm:$0xff]  ;;  %v166_v6 = vld [vmem:[%s1260_s26 + $0x8] sm:$0xff]  ;;  %p645_p8 = scmp.lt.s32.totalorder (%p1143_p4), %s644_s11, 4  ;;  %s1476_s19 = scalar_lea.vmem (%p1143_p4), %s1527_s2, %s892_s14  }
  0x16   : > { %439 = vmatpush.msra.mxu3 %v1161_v4  ;;  %v1216_v27 = vand.u32 4294901760, %v273_v19  ;;  %v1221_v29 = vand.u32 4294901760, %v180_v18  ;;  %v1227_v33 = vand.u32 4294901760, %v279_v20  ;;  %v1231_v34 = vsub.f32 %v181_v13, %v1199_v21  ;;  %v173_v12 = vld [vmem:[%s1526_s1] sm:$0xff] }
  0x17   : > { %194 = vmatpush.msra.mxu0 %v1163_v5  ;;  %372 = vmatpush.msra.mxu2 %v261_v15  ;;  %v257_v30 = vsub.f32 %v255_v14, %v1202_v22  ;;  %v263_v31 = vsub.f32 %v261_v15, %v1204_v23  ;;  %v269_v32 = vsub.f32 %v267_v16, %v1206_v24  ;;  %v1233_v35 = vand.u32 4294901760, %v179_v26 }
  0x18   : > { %441 = vmatpush.msra.mxu3 %v1163_v5  ;;  %v275_v39 = vsub.f32 %v273_v19, %v1216_v27  ;;  %v1241_v40 = vand.u32 4294901760, %v285_v25  ;;  %v1245_v41 = vsub.f32 %v180_v18, %v1221_v29  ;;  %v1248_v42 = vand.u32 4294901760, %v1219_v28 }
  0x19   : > { %196 = vmatpush.msra.mxu0 %v1174_v9  ;;  %375 = vmatpush.msra.mxu2 %v267_v16  ;;  %v258_v37 = vand.u32 4294901760, %v257_v30  ;;  %v264_v38 = vand.u32 4294901760, %v263_v31  ;;  %v270_v44 = vand.u32 4294901760, %v269_v32  ;;  %v281_v45 = vsub.f32 %v279_v20, %v1227_v33 }
  0x1a   : > { %443 = vmatpush.msra.mxu3 %v1174_v9  ;;  %v1255_v46 = vand.u32 4294901760, %v178_v36  ;;  %v1264_v47 = vsub.f32 %v179_v26, %v1233_v35  ;;  %v1267_v48 = vand.u32 4294901760, %v1231_v34  ;;  %v276_v50 = vand.u32 4294901760, %v275_v39 }
  0x1b   : > { %198 = vmatpush.msra.mxu0 %v1176_v10  ;;  %259 = vmatpush.msra.mxu1 %v258_v37  ;;  %v287_v51 = vsub.f32 %v285_v25, %v1241_v40  ;;  %v1274_v52 = vand.u32 4294901760, %v177_v43  ;;  %v293_v53 = vsub.f32 %v1219_v28, %v1248_v42  ;;  %v1280_v54 = vand.u32 4294901760, %v1245_v41 }
  0x1c   : > { %378 = vmatpush.msra.mxu2 %v273_v19  ;;  %445 = vmatpush.msra.mxu3 %v1176_v10  ;;  %v282_v57 = vand.u32 4294901760, %v281_v45  ;;  %v315_v58 = vsub.f32 %v178_v36, %v1255_v46  ;;  %v1288_v59 = vand.u32 4294901760, %v176_v49  ;;  %v299_v60 = vsub.f32 %v1231_v34, %v1267_v48 }
  0x1d   : > { %200 = vmatpush.msra.mxu0 %v1178_v11  ;;  %265 = vmatpush.msra.mxu1 %v264_v38  ;;  %v1294_v61 = vand.u32 4294901760, %v1264_v47  ;;  %v288_v63 = vand.u32 4294901760, %v287_v51  ;;  %v321_v0 = vsub.f32 %v177_v43, %v1274_v52  ;;  %v1301_v1 = vand.u32 4294901760, %v175_v55 }
  0x1e   : > { %381 = vmatpush.msra.mxu2 %v279_v20  ;;  %447 = vmatpush.msra.mxu3 %v1178_v11  ;;  %v169_v2 = vmul.f32 %v165_v56, %v165_v56  ;;  %v294_v7 = vand.u32 4294901760, %v293_v53  ;;  %v305_v8 = vsub.f32 %v1245_v41, %v1280_v54  ;;  %v327_v13 = vsub.f32 %v176_v49, %v1288_v59 }
  0x1f   : > { %202 = vmatpush.msra.mxu0 %v1191_v17  ;;  %271 = vmatpush.msra.mxu1 %v270_v44  ;;  %v1313_v14 = vand.u32 4294901760, %v174_v62  ;;  %v1315_v15 = vand.u32 4294901760, %v315_v58  ;;  %v300_v18 = vand.u32 4294901760, %v299_v60  ;;  %v311_v19 = vsub.f32 %v1264_v47, %v1294_v61 }
  0x20   : > { %384 = vmatpush.msra.mxu2 %v285_v25  ;;  %449 = vmatpush.msra.mxu3 %v1191_v17  ;;  %v1317_v16 = vand.u32 4294901760, %v169_v2  ;;  %v170_v20 = vmul.f32 %v166_v6, %v166_v6  ;;  %v333_v25 = vsub.f32 %v175_v55, %v1301_v1  ;;  %v1325_v26 = vand.u32 4294901760, %v173_v12 }
  0x21   : > { %204 = vmatpush.msra.mxu0 %v1199_v21  ;;  %277 = vmatpush.msra.mxu1 %v276_v50  ;;  %v306_v31 = vand.u32 4294901760, %v305_v8  ;;  %v317_v32 = vsub.f32 %v315_v58, %v1315_v15  ;;  %v1338_v37 = vand.u32 4294901760, %v327_v13  ;;  %v312_v39 = vand.u32 4294901760, %v311_v19 }
  0x22   : > { %387 = vmatpush.msra.mxu2 %v1219_v28  ;;  %451 = vmatpush.msra.mxu3 %v1199_v21  ;;  %v1327_v28 = vand.u32 4294901760, %v321_v0  ;;  %v1330_v30 = vsub.f32 %v169_v2, %v1317_v16  ;;  %v1342_v38 = vand.u32 4294901760, %v170_v20  ;;  %v345_v43 = vsub.f32 %v173_v12, %v1325_v26 }
  0x23   : > { %206 = vmatpush.msra.mxu0 %v1221_v29  ;;  %283 = vmatpush.msra.mxu1 %v282_v57  ;;  %v1347_v44 = vand.u32 4294901760, %v333_v25  ;;  %v318_v49 = vand.u32 4294901760, %v317_v32  ;;  %v329_v50 = vsub.f32 %v327_v13, %v1338_v37 }
  0x24   : > { %390 = vmatpush.msra.mxu2 %v1231_v34  ;;  %453 = vmatpush.msra.mxu3 %v1221_v29  ;;  %v339_v34 = vsub.f32 %v174_v62, %v1313_v14  ;;  %v223_v36 = vand.u32 4294901760, %v1330_v30  ;;  %v1358_v53 = vsub.f32 %v170_v20, %v1342_v38  ;;  %v1362_v57 = vand.u32 4294901760, %v345_v43 }
  0x25   : > { %208 = vmatpush.msra.mxu0 %v1233_v35  ;;  %289 = vmatpush.msra.mxu1 %v288_v63  ;;  %v335_v56 = vsub.f32 %v333_v25, %v1347_v44  ;;  %v330_v62 = vand.u32 4294901760, %v329_v50 }
  0x26   : > { %393 = vmatpush.msra.mxu2 %v1245_v41  ;;  %455 = vmatpush.msra.mxu3 %v1233_v35  ;;  %v323_v41 = vsub.f32 %v321_v0, %v1327_v28  ;;  %v224_v45 = vsub.f32 %v1330_v30, %v223_v36  ;;  %v1354_v51 = vand.u32 4294901760, %v339_v34  ;;  %v347_v6 = vsub.f32 %v345_v43, %v1362_v57 }
  0x27   : > { %210 = vmatpush.msra.mxu0 %v1255_v46  ;;  %295 = vmatpush.msra.mxu1 %v294_v7  ;;  %v336_v2 = vand.u32 4294901760, %v335_v56 }
  0x28   : > { %396 = vmatpush.msra.mxu2 %v1264_v47  ;;  %457 = vmatpush.msra.mxu3 %v1255_v46  ;;  %v167_v47 = vld [vmem:[%s1260_s26 + $0x10] sm:$0xff]  ;;  %v324_v55 = vand.u32 4294901760, %v323_v41  ;;  %v225_v60 = vand.u32 4294901760, %v224_v45  ;;  %v341_v63 = vsub.f32 %v339_v34, %v1354_v51 }
  0x29   : > { %212 = vmatpush.msra.mxu0 %v1274_v52  ;;  %301 = vmatpush.msra.mxu1 %v300_v18  ;;  %v348_v18 = vand.u32 4294901760, %v347_v6 }
  0x2a   : > { %399 = vmatpush.msra.mxu2 %v315_v58  ;;  %459 = vmatpush.msra.mxu3 %v1274_v52  ;;  %v171_v58 = vmul.f32 %v167_v47, %v167_v47  ;;  %v342_v8 = vand.u32 4294901760, %v341_v63 }
  0x2b   : > { %214 = vmatpush.msra.mxu0 %v1288_v59  ;;  %307 = vmatpush.msra.mxu1 %v306_v31 }
  0x2c   : > { %402 = vmatpush.msra.mxu2 %v321_v0  ;;  %461 = vmatpush.msra.mxu3 %v1288_v59  ;;  %v231_v0 = vand.u32 4294901760, %v1358_v53  ;;  %v1371_v7 = vand.u32 4294901760, %v171_v58 }
  0x2d   : > { %216 = vmatpush.msra.mxu0 %v1301_v1  ;;  %313 = vmatpush.msra.mxu1 %v312_v39 }
  0x2e   : > { %405 = vmatpush.msra.mxu2 %v327_v13  ;;  %463 = vmatpush.msra.mxu3 %v1301_v1  ;;  %v232_v12 = vsub.f32 %v1358_v53, %v231_v0  ;;  %v168_v13 = vld [vmem:[%s1260_s26 + $0x18] sm:$0xff]  ;;  %v238_v19 = vsub.f32 %v171_v58, %v1371_v7 }
  0x2f   : > { %218 = vmatpush.msra.mxu0 %v1313_v14  ;;  %319 = vmatpush.msra.mxu1 %v318_v49  ;;  %v172_v20 = vmul.f32 %v168_v13, %v168_v13 }
  0x30   : > { %408 = vmatpush.msra.mxu2 %v333_v25  ;;  %465 = vmatpush.msra.mxu3 %v1313_v14  ;;  %v233_v25 = vand.u32 4294901760, %v232_v12 }
  0x31   : > { %220 = vmatpush.msra.mxu0 %v1325_v26  ;;  %325 = vmatpush.msra.mxu1 %v324_v55 }
  0x32   : > { %411 = vmatpush.msra.mxu2 %v339_v34  ;;  %226 = vmatmul.f32.vlgmr.msra.gmra.mxu0 %v225_v60 }
  0x33   : > { %331 = vmatpush.msra.mxu1 %v330_v62  ;;  %496 = vmatpush.msrb.mxu0 %v1202_v22 }
  0x34   : > { %414 = vmatpush.msra.mxu2 %v345_v43  ;;  %467 = vmatpush.msra.mxu3 %v1325_v26 }
  0x35   : > { %417 = vmatmul.f32.vlgmr.msra.gmra.mxu2 %v1330_v30  ;;  %337 = vmatpush.msra.mxu1 %v336_v2  ;;  %v239_v30 = vand.u32 4294901760, %v238_v19 }
  0x36   : > { %895 = vmatpush.msrb.mxu2 %v1202_v22  ;;  %500 = vmatpush.msrb.mxu0 %v1204_v23  ;;  %v1388_v22 = vand.u32 4294901760, %v172_v20 }
  0x37   : > { %471 = vmatmul.f32.vlgmr.msra.gmra.mxu3 %v223_v36  ;;  %343 = vmatpush.msra.mxu1 %v342_v8 }
  0x38   : > { %896 = vmatpush.msrb.mxu2 %v1204_v23  ;;  %911 = vmatpush.msrb.mxu3 %v1159_v3  ;;  %v240_v23 = vsub.f32 %v238_v19, %v239_v30 }
  0x39   : > { %504 = vmatpush.msrb.mxu0 %v1206_v24  ;;  %349 = vmatpush.msra.mxu1 %v348_v18 }
  0x3a   : > { %897 = vmatpush.msrb.mxu2 %v1206_v24  ;;  %912 = vmatpush.msrb.mxu3 %v1161_v4  ;;  %v246_v24 = vsub.f32 %v172_v20, %v1388_v22 }
  0x3b   : > { %508 = vmatpush.msrb.mxu0 %v1216_v27  ;;  %351 = vmatmul.f32.vlgmr.msra.gmra.mxu1 %v1317_v16 }
  0x3c   : > { %234 = vmatmul.f32.gmra.mxu0 %v233_v25  ;;  %898 = vmatpush.msrb.mxu2 %v1216_v27  ;;  %v241_v27 = vand.u32 4294901760, %v240_v23 }
  0x3d   : > { %913 = vmatpush.msrb.mxu3 %v1163_v5  ;;  %512 = vmatpush.msrb.mxu0 %v1227_v33 }
  0x3e   : > { %575 = vmatpush.msrb.mxu1 %v1159_v3  ;;  %422 = vmatmul.f32.gmra.mxu2 %v1358_v53  ;;  %v247_v3 = vand.u32 4294901760, %v246_v24 }
  0x3f   : > { %899 = vmatpush.msrb.mxu2 %v1227_v33  ;;  %914 = vmatpush.msrb.mxu3 %v1174_v9 }
  0x40   : > { %516 = vmatpush.msrb.mxu0 %v1241_v40  ;;  %577 = vmatpush.msrb.mxu1 %v1161_v4  ;;  %v248_v4 = vsub.f32 %v246_v24, %v247_v3 }
  0x41   : > { %477 = vmatmul.f32.gmra.mxu3 %v231_v0  ;;  %900 = vmatpush.msrb.mxu2 %v1241_v40 }
  0x42   : > { %915 = vmatpush.msrb.mxu3 %v1176_v10  ;;  %520 = vmatpush.msrb.mxu0 %v1248_v42 }
  0x43   : > { %579 = vmatpush.msrb.mxu1 %v1163_v5  ;;  %901 = vmatpush.msrb.mxu2 %v1248_v42  ;;  %v249_v5 = vand.u32 4294901760, %v248_v4 }
  0x44   : > { %916 = vmatpush.msrb.mxu3 %v1178_v11  ;;  %524 = vmatpush.msrb.mxu0 %v1267_v48 }
  0x45   : > { %581 = vmatpush.msrb.mxu1 %v1174_v9  ;;  %242 = vmatmul.f32.gmra.mxu0 %v241_v27 }
  0x46   : > { %355 = vmatmul.f32.gmra.mxu1 %v1342_v38  ;;  %902 = vmatpush.msrb.mxu2 %v1267_v48 }
  0x47   : > { %917 = vmatpush.msrb.mxu3 %v1191_v17  ;;  %528 = vmatpush.msrb.mxu0 %v1280_v54 }
  0x48   : > { %583 = vmatpush.msrb.mxu1 %v1176_v10  ;;  %427 = vmatmul.f32.gmra.mxu2 %v238_v19 }
  0x49   : > { %903 = vmatpush.msrb.mxu2 %v1280_v54  ;;  %918 = vmatpush.msrb.mxu3 %v1199_v21 }
  0x4a   : > { %532 = vmatpush.msrb.mxu0 %v1294_v61  ;;  %585 = vmatpush.msrb.mxu1 %v1178_v11 }
  0x4b   : > { %483 = vmatmul.f32.gmra.mxu3 %v239_v30  ;;  %904 = vmatpush.msrb.mxu2 %v1294_v61 }
  0x4c   : > { %919 = vmatpush.msrb.mxu3 %v1221_v29  ;;  %536 = vmatpush.msrb.mxu0 %v1315_v15 }
  0x4d   : > { %587 = vmatpush.msrb.mxu1 %v1191_v17  ;;  %905 = vmatpush.msrb.mxu2 %v1315_v15 }
  0x4e   : > { %920 = vmatpush.msrb.mxu3 %v1233_v35  ;;  %540 = vmatpush.msrb.mxu0 %v1327_v28 }
  0x4f   : > { %589 = vmatpush.msrb.mxu1 %v1199_v21  ;;  %250 = vmatmul.f32.gmra.mxu0 %v249_v5 }
  0x50   : > { %359 = vmatmul.f32.gmra.mxu1 %v1371_v7  ;;  %906 = vmatpush.msrb.mxu2 %v1327_v28 }
  0x51   : > { %921 = vmatpush.msrb.mxu3 %v1255_v46  ;;  %544 = vmatpush.msrb.mxu0 %v1338_v37 }
  0x52   : > { %591 = vmatpush.msrb.mxu1 %v1221_v29  ;;  %432 = vmatmul.f32.gmra.mxu2 %v246_v24 }
  0x53   : > { %907 = vmatpush.msrb.mxu2 %v1338_v37  ;;  %922 = vmatpush.msrb.mxu3 %v1274_v52 }
  0x54   : > { %548 = vmatpush.msrb.mxu0 %v1347_v44  ;;  %593 = vmatpush.msrb.mxu1 %v1233_v35 }
  0x55   : > { %489 = vmatmul.f32.gmra.mxu3 %v247_v3  ;;  %908 = vmatpush.msrb.mxu2 %v1347_v44 }
  0x56   : > { %923 = vmatpush.msrb.mxu3 %v1288_v59  ;;  %552 = vmatpush.msrb.mxu0 %v1354_v51 }
  0x57   : > { %595 = vmatpush.msrb.mxu1 %v1255_v46  ;;  %909 = vmatpush.msrb.mxu2 %v1354_v51 }
  0x58   : > { %924 = vmatpush.msrb.mxu3 %v1301_v1  ;;  %556 = vmatpush.msrb.mxu0 %v1362_v57 }
  0x59   : > { %597 = vmatpush.msrb.mxu1 %v1274_v52  ;;  %910 = vmatpush.msrb.mxu2 %v1362_v57 }
  0x5a   : > { %363 = vmatmul.f32.gmra.mxu1 %v1388_v22  ;;  %558 = vmatmul.f32.vlgmr.msrb.gmra.mxu0 %v1317_v16 }
  0x5b   : > { %925 = vmatpush.msrb.mxu3 %v1313_v14  ;;  %599 = vmatpush.msrb.mxu1 %v1288_v59 }
  0x5c   : > { %566 = vmatmul.f32.vlgmr.msrb.gmra.mxu2 %v1371_v7 }
  0x5d   : > { %926 = vmatpush.msrb.mxu3 %v1325_v26  ;;  %601 = vmatpush.msrb.mxu1 %v1301_v1 }
  0x5e   : > { %615 = vmatmul.f32.vlgmr.msrb.gmra.mxu3 %v1371_v7 }
  0x5f   : > { %603 = vmatpush.msrb.mxu1 %v1313_v14 }
  0x61   : > { %605 = vmatpush.msrb.mxu1 %v1325_v26 }
  0x62   : > { %562 = vmatmul.f32.gmra.mxu0 %v1342_v38  ;;  %607 = vmatmul.f32.vlgmr.msrb.gmra.mxu1 %v1317_v16 }
  0x64   : > { %570 = vmatmul.f32.gmra.mxu2 %v1388_v22 }
  0x66   : > { %619 = vmatmul.f32.gmra.mxu3 %v1388_v22 }
  0x6a   : > { %611 = vmatmul.f32.gmra.mxu1 %v1342_v38 }
  0xaf   : > { %v227_v9 = vpop.f32.mrf.mxu0 }
  0xb8   : > { %v418_v10 = vpop.f32.mrf.mxu2  ;;  %v352_v11 = vpop.f32.mrf.mxu1 }
  0xb9   : > { %v235_v21 = vpop.f32.mrf.mxu0  ;;  %v353_v54 = vadd.f32 %v352_v11, %v227_v9 }
  0xba   : > { %v472_v17 = vpop.f32.mrf.mxu3 }
  0xbb   : > { %v419_v15 = vadd.f32 %v418_v10, %v353_v54 }
  0xbd   : > { %v473_v28 = vadd.f32 %v472_v17, %v419_v15 }
  0xc1   : > { %v423_v29 = vpop.f32.mrf.mxu2 }
  0xc2   : > { %v243_v40 = vpop.f32.mrf.mxu0 }
  0xc3   : > { %v356_v33 = vpop.f32.mrf.mxu1 }
  0xc4   : > { %v478_v35 = vpop.f32.mrf.mxu3  ;;  %v357_v31 = vadd.f32 %v356_v33, %v235_v21 }
  0xc6   : > { %v424_v41 = vadd.f32 %v423_v29, %v357_v31 }
  0xc8   : > { %v479_v53 = vadd.f32 %v478_v35, %v424_v41 }
  0xcb   : > { %v428_v42 = vpop.f32.mrf.mxu2 }
  0xcc   : > { %v251_v52 = vpop.f32.mrf.mxu0 }
  0xcd   : > { %v360_v46 = vpop.f32.mrf.mxu1 }
  0xce   : > { %v484_v48 = vpop.f32.mrf.mxu3  ;;  %v361_v61 = vadd.f32 %v360_v46, %v243_v40 }
  0xd0   : > { %v429_v16 = vadd.f32 %v428_v42, %v361_v61 }
  0xd2   : > { %v485_v32 = vadd.f32 %v484_v48, %v429_v16 }
  0xd5   : > { %v433_v59 = vpop.f32.mrf.mxu2 }
  0xd7   : > { %v364_v1 = vpop.f32.mrf.mxu1  ;;  %v559_v26 = vpop.f32.mrf.mxu0 }
  0xd8   : > { %v490_v14 = vpop.f32.mrf.mxu3  ;;  %v365_v34 = vadd.f32 %v364_v1, %v251_v52  ;;  %v560_v36 = vadd.f32 %v559_v26, %v473_v28 }
  0xda   : > { %v434_v45 = vadd.f32 %v433_v59, %v365_v34 }
  0xdc   : > { %v491_v56 = vadd.f32 %v490_v14, %v434_v45 }
  0xdf   : > { %v567_v37 = vpop.f32.mrf.mxu2  ;;  %v608_v39 = vpop.f32.mrf.mxu1 }
  0xe0   : > { %v568_v38 = vadd.f32 %v567_v37, %v485_v32  ;;  %v609_v43 = vadd.f32 %v608_v39, %v560_v36  ;;  %v563_v50 = vpop.f32.mrf.mxu0 }
  0xe1   : > { %v616_v44 = vpop.f32.mrf.mxu3  ;;  %v564_v58 = vadd.f32 %v563_v50, %v479_v53 }
  0xe2   : > { %v617_v47 = vadd.f32 %v616_v44, %v568_v38  ;;  %v623_v49 = vmul.f32 -0.5, %v609_v43 }
  0xe4   : > { %v625_v51 = vmul.f32 -0.5, %v617_v47  ;;  %v871_v55 = vadd.f32 -29.406033, %v623_v49 }
  0xe6   : > { %v873_v57 = vadd.f32 -29.406033, %v625_v51  ;;  %632 = vst.msk [vmem:[%s1459_s9] sm:$0xff] %vm631_vm0, %v871_v55 }
  0xe7   : > { %v571_v60 = vpop.f32.mrf.mxu2  ;;  %v612_v63 = vpop.f32.mrf.mxu1 }
  0xe8   : > { %634 = vst.msk [vmem:[%s1459_s9 + $0x10] sm:$0xff] %vm631_vm0, %v873_v57  ;;  %v572_v62 = vadd.f32 %v571_v60, %v491_v56  ;;  %v613_v0 = vadd.f32 %v612_v63, %v564_v58 }
  0xe9   : > { %v620_v2 = vpop.f32.mrf.mxu3 }
  0xea   : > { %v621_v6 = vadd.f32 %v620_v2, %v572_v62  ;;  %v624_v7 = vmul.f32 -0.5, %v613_v0 }
  0xec   : > { %v626_v8 = vmul.f32 -0.5, %v621_v6  ;;  %v872_v12 = vadd.f32 -29.406033, %v624_v7  ;;  %642 = sbr.rel (!%p1143_p4) target bundleno = 280 (0x118), region = 32 }
  0xee   : > { %v874_v13 = vadd.f32 -29.406033, %v626_v8  ;;  %633 = vst.msk [vmem:[%s1459_s9 + $0x8] sm:$0xff] %vm631_vm0, %v872_v12 }
  0xf0   : > { %635 = vst.msk [vmem:[%s1459_s9 + $0x18] sm:$0xff] %vm631_vm0, %v874_v13 }
  0xf1   : > { %s1536_s11 = smov (!%p645_p8, %s644_s11), 4 }
  0xf2   : > { %s877_s20 = sshll.u32 %s1536_s11, 3 }
  0xf3   : > { %p880_p9 = scmp.eq.s32.totalorder %s877_s20, 0 }
  0xf4   : > { %s1482_s21 = sshrl.u32 (!%p880_p9), %s1536_s11, 2 }
  0xf5   : > { %653 = sbr.rel (%p880_p9) target bundleno = 280 (0x118), region = 36  ;;  %p881_p10 = scmp.le.s32.totalorder (!%p880_p9), %s1482_s21, 0 }
  0xfa   : > { %820 = sbr.rel (%p881_p10) target bundleno = 263 (0x107), region = 112  ;;  %s1529_s12 = smov (!%p881_p10), %s1476_s19 }
  0xfb   : > { %s1530_s17 = smov (!%p881_p10), %s1459_s9  ;;  %s1491_s24 = smov (!%p881_p10), 0  }
  0xfc   : > { %s1083_s22 = smov (!%p881_p10), 0  }
  0xff LB: >> { %v722_v18 = vld [vmem:[%s1077_s17] sm:$0xff]  ;;  %v724_v19 = vld [vmem:[%s1077_s17 + $0x8] sm:$0xff]  ;;  %v726_v20 = vld [vmem:[%s1077_s17 + $0x10] sm:$0xff]  ;;  %s730_s23 = sadd.s32 1, %s1081_s24  ;;  %s716_s22 = sadd.s32 1, %s1085_s22   ;;  %s1085_s22 = sphi %s1083_s22, %s716_s22   ;;  %s1081_s24 = sphi %s1491_s24, %s1531_s24   ;;  %s1077_s17 = sphi %s1530_s17, %s735_s17   ;;  %s1073_s12 = sphi %s1529_s12, %s736_s12  }
 0x100   : >> { %723 = vst [vmem:[%s1073_s12] sm:$0xff] %v722_v18  ;;  %v728_v25 = vld [vmem:[%s1077_s17 + $0x18] sm:$0xff]  ;;  %p731_p11 = scmp.ge.s32.totalorder %s730_s23, %s1482_s21  ;;  %p715_p12 = scmp.ge.s32.totalorder %s716_s22, %s1482_s21 }
 0x101   : >> { %725 = vst [vmem:[%s1073_s12 + $0x8] sm:$0xff] %v724_v19 }
 0x102   : >> { %727 = vst [vmem:[%s1073_s12 + $0x10] sm:$0xff] %v726_v20  ;;  %s1538_s23 = smov (%p731_p11, %s730_s23), 0  ;;  %718 = sbr.rel (!%p715_p12) target bundleno = 255 (0xff), region = 118 }
 0x103   : >> { %729 = vst [vmem:[%s1073_s12 + $0x18] sm:$0xff] %v728_v25  ;;  %s882_s25 = sshll.u32 %s1538_s23, 5  ;;  %s1531_s24 = smov %s1538_s23 }
 0x104   : >> { %s735_s17 = scalar_lea.vmem %s1459_s9, %s882_s25 [#allocation2]   ;;  %s736_s12 = scalar_lea.vmem %s1476_s19, %s882_s25  }
 0x107 PF: > { %s1507_s26 = sand.u32 3, %s1536_s11   ;;  %s893_s27 = sshll.u32 %s1482_s21, 5 }
 0x108   : > { %s741_s28 = scalar_lea.vmem %s1459_s9, %s893_s27 [#allocation2]   ;;  %s743_s29 = scalar_lea.vmem %s1476_s19, %s893_s27  }
 0x109   : > { %p887_p13 = scmp.le.s32.totalorder %s1507_s26, 0 }
 0x10a   : > { %s1087_s30 = smov (!%p887_p13), %s743_s29   ;;  %s1091_s3 = smov (!%p887_p13), %s741_s28  }
 0x10b   : > { %834 = sbr.rel (%p887_p13) target bundleno = 280 (0x118), region = 123  ;;  %s1095_s4 = smov (!%p887_p13), 0  }
 0x10c   : > { %s1099_s5 = smov (!%p887_p13), 0  }
 0x110 LB: >> { %v753_v30 = vld [vmem:[%s1093_s3] sm:$0xff]  ;;  %s755_s6 = sadd.s32 1, %s1097_s4  ;;  %s747_s5 = sadd.s32 1, %s1101_s5   ;;  %s1101_s5 = sphi %s1099_s5, %s747_s5   ;;  %s1097_s4 = sphi %s1095_s4, %s1096_s4   ;;  %s1093_s3 = sphi %s1091_s3, %s760_s3   ;;  %s1089_s30 = sphi %s1087_s30, %s761_s30  }
 0x111   : >> { %754 = vst [vmem:[%s1089_s30] sm:$0xff] %v753_v30  ;;  %p756_p0 = scmp.ge.s32.totalorder %s755_s6, %s1507_s26  ;;  %p746_p1 = scmp.ge.s32.totalorder %s747_s5, %s1507_s26 }
 0x113   : >> { %s1540_s6 = smov (%p756_p0, %s755_s6), 0  ;;  %749 = sbr.rel (!%p746_p1) target bundleno = 272 (0x110), region = 129 }
 0x114   : >> { %s888_s7 = sshll.u32 %s1540_s6, 3  ;;  %s1096_s4 = smov %s1540_s6  }
 0x115   : >> { %s760_s3 = scalar_lea.vmem %s741_s28, %s888_s7 [#allocation2]   ;;  %s761_s30 = scalar_lea.vmem %s743_s29, %s888_s7  }
 0x118 PF: > { %p9_p2 = scmp.ge.s32.totalorder %s1133_s13, 4   ;;  %s1532_s9 = smov %s1065_s10 }
 0x119   : > { %s1533_s10 = smov %s1141_s16  ;;  %s1534_s11 = smov %s1133_s13 }
 0x11a   :  { %11 = sbr.rel (!%p9_p2) target bundleno = 2 (0x2), region = 140 }

</bundles_post_ra>
